<compile_context>
chip_gen: v7x
topology: tpu7x:2x2x1
jax: 0.10.0
libtpu: 0.0.40
codegen_flags: <defaults>
</compile_context>

<pallas_src>
import functools

import jax
import jax.numpy as jnp
from jax.experimental import pallas as pl
from jax.experimental.pallas import tpu as pltpu


def fc_vae_kernel(
    x_ref, eps_ref,
    w1_ref, b1_ref,
    wh_ref, bh_ref,       # fused (mu|logvar) head, padded to 128 lanes
    w3_ref, b3_ref,
    w4_ref, b4_ref,
    recon_ref, head_ref,
    *, num_z,
):
    # ---- encode ----
    x = x_ref[...].astype(jnp.bfloat16)                       # (TB, D) bf16 for MXU
    h1 = jnp.dot(x, w1_ref[...], preferred_element_type=jnp.float32) + b1_ref[...]
    h1 = jnp.maximum(h1, 0.0)                                  # ReLU, fp32

    # fused mu/logvar head: one matmul, 128-wide lane-dense output
    head = jnp.dot(h1.astype(jnp.bfloat16), wh_ref[...],
                   preferred_element_type=jnp.float32) + bh_ref[...]
    head_ref[...] = head.astype(head_ref.dtype)                # lane-dense store

    mu = head[:, :num_z]                                       # (TB, num_z)
    logvar = head[:, num_z:2 * num_z]                          # (TB, num_z)

    # ---- reparameterize (training-mode semantics, eps supplied) ----
    std = jnp.exp(0.5 * logvar)
    z = eps_ref[...] * std + mu

    # ---- decode ----
    h3 = jnp.dot(z.astype(jnp.bfloat16), w3_ref[...],
                 preferred_element_type=jnp.float32) + b3_ref[...]
    h3 = jnp.maximum(h3, 0.0)                                  # ReLU
    logits = jnp.dot(h3.astype(jnp.bfloat16), w4_ref[...],
                     preferred_element_type=jnp.float32) + b4_ref[...]
    # sigmoid via EUP exp + approx reciprocal (keeps VALU slots free)
    recon = pl.reciprocal(1.0 + jnp.exp(-logits), approx=True)
    recon_ref[...] = recon.astype(recon_ref.dtype)


def fc_vae_forward(x_flat, eps, params, *, tile_b=256):
    """x_flat: (B, input_size) float32, eps: (B, NUM_Z) float32.

    Returns (recon, mu, logvar) exactly like FC_VAE.forward in training mode.
    """
    B, input_size = x_flat.shape
    num_z = eps.shape[1]
    (w1, b1, w21, b21, w22, b22, w3, b3, w4, b4) = params
    hidden_1 = w1.shape[1]

    # ---- fuse fc21/fc22 into one head, padded to a 128-lane-dense slab ----
    head_w = max(128, ((2 * num_z + 127) // 128) * 128)
    w_head = (jnp.zeros((hidden_1, head_w), jnp.float32)
              .at[:, :num_z].set(w21)
              .at[:, num_z:2 * num_z].set(w22))
    b_head = (jnp.zeros((1, head_w), jnp.float32)
              .at[:, :num_z].set(b21)
              .at[:, num_z:2 * num_z].set(b22))

    # ---- cast weights once to bf16 (fp32 accumulation inside the kernel) ----
    w1_b = w1.astype(jnp.bfloat16)
    wh_b = w_head.astype(jnp.bfloat16)
    w3_b = w3.astype(jnp.bfloat16)
    w4_b = w4.astype(jnp.bfloat16)

    # ---- batch tiling: pad B to a multiple of the (sublane-aligned) tile ----
    b_pad = max(8, ((B + 7) // 8) * 8)
    tb = min(tile_b, b_pad)
    b_pad = ((b_pad + tb - 1) // tb) * tb
    if b_pad != B:
        x_flat = jnp.pad(x_flat, ((0, b_pad - B), (0, 0)))
        eps = jnp.pad(eps, ((0, b_pad - B), (0, 0)))
    grid = (b_pad // tb,)

    batch_spec = lambda last: pl.BlockSpec((tb, last), lambda i: (i, 0))
    resident = lambda shape: pl.BlockSpec(shape, lambda i: (0, 0))  # weights stay in VMEM

    out_shapes = (
        jax.ShapeDtypeStruct((b_pad, input_size), jnp.float32),   # recon
        jax.ShapeDtypeStruct((b_pad, head_w), jnp.float32),       # fused mu|logvar slab
    )

    recon_pad, head_pad = pl.pallas_call(
        functools.partial(fc_vae_kernel, num_z=num_z),
        out_shape=out_shapes,
        grid=grid,
        in_specs=[
            batch_spec(input_size),                 # x
            batch_spec(num_z),                      # eps
            resident((input_size, hidden_1)),       # w1 (bf16)
            resident((1, hidden_1)),                # b1
            resident((hidden_1, head_w)),           # w_head (bf16)
            resident((1, head_w)),                  # b_head
            resident((num_z, hidden_1)),            # w3 (bf16)
            resident((1, hidden_1)),                # b3
            resident((hidden_1, input_size)),       # w4 (bf16)
            resident((1, input_size)),              # b4
        ],
        out_specs=(
            pl.BlockSpec((tb, input_size), lambda i: (i, 0)),
            pl.BlockSpec((tb, head_w), lambda i: (i, 0)),
        ),
        compiler_params=pltpu.CompilerParams(
            dimension_semantics=("parallel",)),     # 2nd TC on v7x; no-op on v5e/v6e
    )(x_flat, eps, w1_b, b1, wh_b, b_head, w3_b, b3, w4_b, b4)

    recon = recon_pad[:B]
    mu = head_pad[:B, :num_z]
    logvar = head_pad[:B, num_z:2 * num_z]
    return recon, mu, logvar


def init_linear(key, fan_in, fan_out):
    """Deterministic init mimicking PyTorch nn.Linear default (uniform +-1/sqrt(fan_in)).
    Returns weight already transposed to (in, out) and bias as (1, out)."""
    kw, kb = jax.random.split(key)
    bound = 1.0 / jnp.sqrt(jnp.float32(fan_in))
    w = jax.random.uniform(kw, (fan_in, fan_out), jnp.float32, -bound, bound)
    b = jax.random.uniform(kb, (1, fan_out), jnp.float32, -bound, bound)
    return w, b


def reference_forward(x_flat, eps, params):
    (w1, b1, w21, b21, w22, b22, w3, b3, w4, b4) = params
    h1 = jnp.maximum(x_flat @ w1 + b1, 0.0)
    mu = h1 @ w21 + b21
    logvar = h1 @ w22 + b22
    z = eps * jnp.exp(0.5 * logvar) + mu
    h3 = jnp.maximum(z @ w3 + b3, 0.0)
    recon = jax.nn.sigmoid(h3 @ w4 + b4)
    return recon, mu, logvar


if __name__ == "__main__":
    # Small shapes consistent with the module:
    #   input images (N, C, H, W) = (2, 4, 8, 8)  ->  input_size = 256
    batch, C, H, W = 2, 4, 8, 8
    input_size = C * H * W
    HIDDEN_1 = 32
    NUM_Z = 8

    key = jax.random.PRNGKey(0)
    k_x, k_eps, k1, k21, k22, k3, k4 = jax.random.split(key, 7)

    x = jax.random.uniform(k_x, (batch, C, H, W), jnp.float32)     # image-like input in [0,1)
    x_flat = x.reshape(-1, input_size)                              # x.view(-1, input_size)
    eps = jax.random.normal(k_eps, (batch, NUM_Z), jnp.float32)     # deterministic reparam noise

    w1, b1 = init_linear(k1, input_size, HIDDEN_1)    # fc1
    w21, b21 = init_linear(k21, HIDDEN_1, NUM_Z)      # fc21 (mu)
    w22, b22 = init_linear(k22, HIDDEN_1, NUM_Z)      # fc22 (logvar)
    w3, b3 = init_linear(k3, NUM_Z, HIDDEN_1)         # fc3
    w4, b4 = init_linear(k4, HIDDEN_1, input_size)    # fc4
    params = (w1, b1, w21, b21, w22, b22, w3, b3, w4, b4)

    recon, mu, logvar = fc_vae_forward(x_flat, eps, params)
    jax.block_until_ready((recon, mu, logvar))

    # sanity check against plain-JAX fp32 reference (kernel runs bf16 MXU / fp32 acc,
    # so tolerance is loosened accordingly)
    r_ref, mu_ref, lv_ref = reference_forward(x_flat, eps, params)
    assert recon.shape == (batch, input_size)
    assert mu.shape == (batch, NUM_Z) and logvar.shape == (batch, NUM_Z)
    assert jnp.allclose(mu, mu_ref, atol=2e-2), jnp.max(jnp.abs(mu - mu_ref))
    assert jnp.allclose(logvar, lv_ref, atol=2e-2), jnp.max(jnp.abs(logvar - lv_ref))
    assert jnp.allclose(recon, r_ref, atol=2e-2), jnp.max(jnp.abs(recon - r_ref))

    print("KERNEL_OK")
</pallas_src>

<mosaic_0001>
module attributes {stable_mosaic.version = 11 : i64} {
  func.func @fc_vae_kernel(%arg0: i32, %arg1: memref<8x256xf32, #tpu.memory_space<vmem>>, %arg2: memref<8x8xf32, #tpu.memory_space<vmem>>, %arg3: memref<256x32xbf16, #tpu.memory_space<vmem>>, %arg4: memref<1x32xf32, #tpu.memory_space<vmem>>, %arg5: memref<32x128xbf16, #tpu.memory_space<vmem>>, %arg6: memref<1x128xf32, #tpu.memory_space<vmem>>, %arg7: memref<8x32xbf16, #tpu.memory_space<vmem>>, %arg8: memref<1x32xf32, #tpu.memory_space<vmem>>, %arg9: memref<32x256xbf16, #tpu.memory_space<vmem>>, %arg10: memref<1x256xf32, #tpu.memory_space<vmem>>, %arg11: memref<8x256xf32, #tpu.memory_space<vmem>>, %arg12: memref<8x128xf32, #tpu.memory_space<vmem>>) attributes {dimension_semantics = [#tpu.dimension_semantics<parallel>], iteration_bounds = array<i64: 1>, scalar_prefetch = 0 : i64, scratch_operands = 0 : i64, tpu.core_type = #tpu.core_type<tc>, window_params = [{transform_indices = @transform_0, window_bounds = array<i64: 8, 256>}, {transform_indices = @transform_1, window_bounds = array<i64: 8, 8>}, {pipeline_mode = #tpu.pipeline_mode<synchronous>, transform_indices = @transform_2, window_bounds = array<i64: 256, 32>}, {pipeline_mode = #tpu.pipeline_mode<synchronous>, transform_indices = @transform_3, window_bounds = array<i64: 1, 32>}, {pipeline_mode = #tpu.pipeline_mode<synchronous>, transform_indices = @transform_4, window_bounds = array<i64: 32, 128>}, {pipeline_mode = #tpu.pipeline_mode<synchronous>, transform_indices = @transform_5, window_bounds = array<i64: 1, 128>}, {pipeline_mode = #tpu.pipeline_mode<synchronous>, transform_indices = @transform_6, window_bounds = array<i64: 8, 32>}, {pipeline_mode = #tpu.pipeline_mode<synchronous>, transform_indices = @transform_7, window_bounds = array<i64: 1, 32>}, {pipeline_mode = #tpu.pipeline_mode<synchronous>, transform_indices = @transform_8, window_bounds = array<i64: 32, 256>}, {pipeline_mode = #tpu.pipeline_mode<synchronous>, transform_indices = @transform_9, window_bounds = array<i64: 1, 256>}, {transform_indices = @transform_10, window_bounds = array<i64: 8, 256>}, {transform_indices = @transform_11, window_bounds = array<i64: 8, 128>}]} {
    %c0 = arith.constant 0 : index
    %c0_0 = arith.constant 0 : index
    %0 = vector.load %arg1[%c0, %c0_0] : memref<8x256xf32, #tpu.memory_space<vmem>>, vector<8x256xf32>
    %1 = arith.truncf %0 : vector<8x256xf32> to vector<8x256xbf16>
    %c0_1 = arith.constant 0 : index
    %c0_2 = arith.constant 0 : index
    %2 = vector.load %arg3[%c0_1, %c0_2] : memref<256x32xbf16, #tpu.memory_space<vmem>>, vector<256x32xbf16>
    %cst = arith.constant dense<0.000000e+00> : vector<8x32xf32>
    %3 = tpu.matmul %1, %2, %cst {dimension_numbers = #tpu.dot_dimension_numbers<[1], [0], [0], [1], [0, 0, 1, 1], [], []>} : vector<8x256xbf16>, vector<256x32xbf16>, vector<8x32xf32> -> vector<8x32xf32>
    %c0_3 = arith.constant 0 : index
    %c0_4 = arith.constant 0 : index
    %4 = vector.load %arg4[%c0_3, %c0_4] : memref<1x32xf32, #tpu.memory_space<vmem>>, vector<1x32xf32>
    %5 = vector.broadcast %4 : vector<1x32xf32> to vector<8x32xf32>
    %6 = arith.addf %3, %5 : vector<8x32xf32>
    %cst_5 = arith.constant 0.000000e+00 : f32
    %7 = vector.broadcast %cst_5 : f32 to vector<8x32xf32>
    %8 = arith.maximumf %6, %7 : vector<8x32xf32>
    %9 = arith.truncf %8 : vector<8x32xf32> to vector<8x32xbf16>
    %c0_6 = arith.constant 0 : index
    %c0_7 = arith.constant 0 : index
    %10 = vector.load %arg5[%c0_6, %c0_7] : memref<32x128xbf16, #tpu.memory_space<vmem>>, vector<32x128xbf16>
    %cst_8 = arith.constant dense<0.000000e+00> : vector<8x128xf32>
    %11 = tpu.matmul %9, %10, %cst_8 {dimension_numbers = #tpu.dot_dimension_numbers<[1], [0], [0], [1], [0, 0, 1, 1], [], []>} : vector<8x32xbf16>, vector<32x128xbf16>, vector<8x128xf32> -> vector<8x128xf32>
    %c0_9 = arith.constant 0 : index
    %c0_10 = arith.constant 0 : index
    %12 = vector.load %arg6[%c0_9, %c0_10] : memref<1x128xf32, #tpu.memory_space<vmem>>, vector<1x128xf32>
    %13 = vector.broadcast %12 : vector<1x128xf32> to vector<8x128xf32>
    %14 = arith.addf %11, %13 : vector<8x128xf32>
    %c0_11 = arith.constant 0 : index
    %c0_12 = arith.constant 0 : index
    %15 = vector.load %arg12[%c0_11, %c0_12] : memref<8x128xf32, #tpu.memory_space<vmem>>, vector<8x128xf32>
    tpu.vector_store %arg12[%c0_11, %c0_12], %14 {strides = array<i32>} : memref<8x128xf32, #tpu.memory_space<vmem>>, vector<8x128xf32>,
    %16 = vector.extract_strided_slice %14 {offsets = [0, 0], sizes = [8, 8], strides = [1, 1]} : vector<8x128xf32> to vector<8x8xf32>
    %17 = vector.extract_strided_slice %14 {offsets = [0, 8], sizes = [8, 8], strides = [1, 1]} : vector<8x128xf32> to vector<8x8xf32>
    %cst_13 = arith.constant 5.000000e-01 : f32
    %18 = vector.broadcast %cst_13 : f32 to vector<8x8xf32>
    %19 = arith.mulf %18, %17 : vector<8x8xf32>
    %20 = math.exp %19 : vector<8x8xf32>
    %c0_14 = arith.constant 0 : index
    %c0_15 = arith.constant 0 : index
    %21 = vector.load %arg2[%c0_14, %c0_15] : memref<8x8xf32, #tpu.memory_space<vmem>>, vector<8x8xf32>
    %22 = arith.mulf %21, %20 : vector<8x8xf32>
    %23 = arith.addf %22, %16 : vector<8x8xf32>
    %24 = arith.truncf %23 : vector<8x8xf32> to vector<8x8xbf16>
    %c0_16 = arith.constant 0 : index
    %c0_17 = arith.constant 0 : index
    %25 = vector.load %arg7[%c0_16, %c0_17] : memref<8x32xbf16, #tpu.memory_space<vmem>>, vector<8x32xbf16>
    %cst_18 = arith.constant dense<0.000000e+00> : vector<8x32xf32>
    %26 = tpu.matmul %24, %25, %cst_18 {dimension_numbers = #tpu.dot_dimension_numbers<[1], [0], [0], [1], [0, 0, 1, 1], [], []>} : vector<8x8xbf16>, vector<8x32xbf16>, vector<8x32xf32> -> vector<8x32xf32>
    %c0_19 = arith.constant 0 : index
    %c0_20 = arith.constant 0 : index
    %27 = vector.load %arg8[%c0_19, %c0_20] : memref<1x32xf32, #tpu.memory_space<vmem>>, vector<1x32xf32>
    %28 = vector.broadcast %27 : vector<1x32xf32> to vector<8x32xf32>
    %29 = arith.addf %26, %28 : vector<8x32xf32>
    %cst_21 = arith.constant 0.000000e+00 : f32
    %30 = vector.broadcast %cst_21 : f32 to vector<8x32xf32>
    %31 = arith.maximumf %29, %30 : vector<8x32xf32>
    %32 = arith.truncf %31 : vector<8x32xf32> to vector<8x32xbf16>
    %c0_22 = arith.constant 0 : index
    %c0_23 = arith.constant 0 : index
    %33 = vector.load %arg9[%c0_22, %c0_23] : memref<32x256xbf16, #tpu.memory_space<vmem>>, vector<32x256xbf16>
    %cst_24 = arith.constant dense<0.000000e+00> : vector<8x256xf32>
    %34 = tpu.matmul %32, %33, %cst_24 {dimension_numbers = #tpu.dot_dimension_numbers<[1], [0], [0], [1], [0, 0, 1, 1], [], []>} : vector<8x32xbf16>, vector<32x256xbf16>, vector<8x256xf32> -> vector<8x256xf32>
    %c0_25 = arith.constant 0 : index
    %c0_26 = arith.constant 0 : index
    %35 = vector.load %arg10[%c0_25, %c0_26] : memref<1x256xf32, #tpu.memory_space<vmem>>, vector<1x256xf32>
    %36 = vector.broadcast %35 : vector<1x256xf32> to vector<8x256xf32>
    %37 = arith.addf %34, %36 : vector<8x256xf32>
    %cst_27 = arith.constant 0.000000e+00 : f32
    %38 = vector.broadcast %cst_27 : f32 to vector<8x256xf32>
    %39 = arith.subf %38, %37 : vector<8x256xf32>
    %40 = math.exp %39 : vector<8x256xf32>
    %cst_28 = arith.constant 1.000000e+00 : f32
    %41 = vector.broadcast %cst_28 : f32 to vector<8x256xf32>
    %42 = arith.addf %41, %40 : vector<8x256xf32>
    %43 = tpu.reciprocal %42 {approx = true} : vector<8x256xf32> -> vector<8x256xf32>
    %c0_29 = arith.constant 0 : index
    %c0_30 = arith.constant 0 : index
    %44 = vector.load %arg11[%c0_29, %c0_30] : memref<8x256xf32, #tpu.memory_space<vmem>>, vector<8x256xf32>
    tpu.vector_store %arg11[%c0_29, %c0_30], %43 {strides = array<i32>} : memref<8x256xf32, #tpu.memory_space<vmem>>, vector<8x256xf32>,
    return
  }
  func.func @transform_0(%arg0: i32) -> (i32, i32) {
    %c0_i32 = arith.constant 0 : i32
    %c0_i32_0 = arith.constant 0 : i32
    return %arg0, %c0_i32 : i32, i32
  }
  func.func @transform_1(%arg0: i32) -> (i32, i32) {
    %c0_i32 = arith.constant 0 : i32
    %c0_i32_0 = arith.constant 0 : i32
    return %arg0, %c0_i32 : i32, i32
  }
  func.func @transform_2(%arg0: i32) -> (i32, i32) {
    %c0_i32 = arith.constant 0 : i32
    %c0_i32_0 = arith.constant 0 : i32
    %c0_i32_1 = arith.constant 0 : i32
    return %c0_i32, %c0_i32_0 : i32, i32
  }
  func.func @transform_3(%arg0: i32) -> (i32, i32) {
    %c0_i32 = arith.constant 0 : i32
    %c0_i32_0 = arith.constant 0 : i32
    %c0_i32_1 = arith.constant 0 : i32
    return %c0_i32, %c0_i32_0 : i32, i32
  }
  func.func @transform_4(%arg0: i32) -> (i32, i32) {
    %c0_i32 = arith.constant 0 : i32
    %c0_i32_0 = arith.constant 0 : i32
    %c0_i32_1 = arith.constant 0 : i32
    return %c0_i32, %c0_i32_0 : i32, i32
  }
  func.func @transform_5(%arg0: i32) -> (i32, i32) {
    %c0_i32 = arith.constant 0 : i32
    %c0_i32_0 = arith.constant 0 : i32
    %c0_i32_1 = arith.constant 0 : i32
    return %c0_i32, %c0_i32_0 : i32, i32
  }
  func.func @transform_6(%arg0: i32) -> (i32, i32) {
    %c0_i32 = arith.constant 0 : i32
    %c0_i32_0 = arith.constant 0 : i32
    %c0_i32_1 = arith.constant 0 : i32
    return %c0_i32, %c0_i32_0 : i32, i32
  }
  func.func @transform_7(%arg0: i32) -> (i32, i32) {
    %c0_i32 = arith.constant 0 : i32
    %c0_i32_0 = arith.constant 0 : i32
    %c0_i32_1 = arith.constant 0 : i32
    return %c0_i32, %c0_i32_0 : i32, i32
  }
  func.func @transform_8(%arg0: i32) -> (i32, i32) {
    %c0_i32 = arith.constant 0 : i32
    %c0_i32_0 = arith.constant 0 : i32
    %c0_i32_1 = arith.constant 0 : i32
    return %c0_i32, %c0_i32_0 : i32, i32
  }
  func.func @transform_9(%arg0: i32) -> (i32, i32) {
    %c0_i32 = arith.constant 0 : i32
    %c0_i32_0 = arith.constant 0 : i32
    %c0_i32_1 = arith.constant 0 : i32
    return %c0_i32, %c0_i32_0 : i32, i32
  }
  func.func @transform_10(%arg0: i32) -> (i32, i32) {
    %c0_i32 = arith.constant 0 : i32
    %c0_i32_0 = arith.constant 0 : i32
    return %arg0, %c0_i32 : i32, i32
  }
  func.func @transform_11(%arg0: i32) -> (i32, i32) {
    %c0_i32 = arith.constant 0 : i32
    %c0_i32_0 = arith.constant 0 : i32
    return %arg0, %c0_i32 : i32, i32
  }
}

</mosaic_0001>

<bundles_post_ra>
// kernel: tpu_custom_call.1
= control target key start
LH: loop header
LB: loop body
LE: loop exit
PB: predicated region body
PF: predicated region fallthrough
CT: control target
= control target key end

     0   :  { %17 = vsyncpa [#allocation3], 0  ;;  %s817_s0 = inlined_call_operand.vmem [shape: f32[8,256], index: 0, kind: input, shape index: {}]   ;;  %s818_s1 = inlined_call_operand.vmem [shape: f32[8,8], index: 1, kind: input, shape index: {}]   ;;  %s819_s2 = inlined_call_operand.vmem [shape: bf16[256,32], index: 2, kind: input, shape index: {}]   ;;  %s820_s3 = inlined_call_operand.vmem [shape: f32[1,32], index: 3, kind: input, shape index: {}]   ;;  %s821_s4 = inlined_call_operand.vmem [shape: bf16[32,128], index: 4, kind: input, shape index: {}]   ;;  %s822_s5 = inlined_call_operand.vmem [shape: f32[1,128], index: 5, kind: input, shape index: {}]   ;;  %s823_s6 = inlined_call_operand.vmem [shape: bf16[8,32], index: 6, kind: input, shape index: {}]   ;;  %s824_s7 = inlined_call_operand.vmem [shape: f32[1,32], index: 7, kind: input, shape index: {}]   ;;  %s825_s8 = inlined_call_operand.vmem [shape: bf16[32,256], index: 8, kind: input, shape index: {}]   ;;  %s826_s9 = inlined_call_operand.vmem [shape: f32[1,256], index: 9, kind: input, shape index: {}]   ;;  %s827_s10 = inlined_call_operand.hbm [shape: f32[8,256], index: 10, kind: output, shape index: {0}]   ;;  %s828_s11 = inlined_call_operand.hbm [shape: f32[8,128], index: 11, kind: output, shape index: {1}]  }
   0x1   :  { %v553_v0 = vld [vmem:[%s819_s2 + $0x40] sm:$0xff]   ;;  %v555_v2 = vld [vmem:[%s819_s2 + $0x48] sm:$0xff]   ;;  %v557_v4 = vld [vmem:[%s819_s2 + $0x50] sm:$0xff]  }
   0x2   :  { %v554_v1 = vld [vmem:[%s819_s2] sm:$0xff]   ;;  %506 = vmatprep.subr.bf16.mxu0 %v553_v0  ;;  %v556_v3 = vld [vmem:[%s819_s2 + $0x8] sm:$0xff]   ;;  %v558_v5 = vld [vmem:[%s819_s2 + $0x10] sm:$0xff]  }
   0x3   :  { %507 = vmatpush3.bf16.msra.mxu0 %v554_v1  ;;  %v559_v6 = vld [vmem:[%s819_s2 + $0x58] sm:$0xff]   ;;  %v561_v8 = vld [vmem:[%s819_s2 + $0x60] sm:$0xff]   ;;  %v563_v10 = vld [vmem:[%s819_s2 + $0x68] sm:$0xff]  }
   0x4   :  { %508 = vmatprep.subr.bf16.mxu0 %v555_v2  ;;  %v560_v7 = vld [vmem:[%s819_s2 + $0x18] sm:$0xff]   ;;  %v562_v9 = vld [vmem:[%s819_s2 + $0x20] sm:$0xff]   ;;  %v41_v11 = vld [vmem:[%s817_s0 + $0x8] sm:$0xff] }
   0x5   :  { %v43_v12 = vpack.c.bf16 %v41_v11, %v41_v11  ;;  %v564_v13 = vld [vmem:[%s819_s2 + $0x28] sm:$0xff]  }
   0x7   :  { %509 = vmatpush3.bf16.msra.mxu0 %v556_v3  ;;  %211 = vmatprep.mubr.bf16.mxu0 %v43_v12 }
   0x8   :  { %510 = vmatprep.subr.bf16.mxu0 %v557_v4 }
   0xb   :  { %511 = vmatpush3.bf16.msra.mxu0 %v558_v5 }
   0xc   :  { %512 = vmatprep.subr.bf16.mxu0 %v559_v6 }
   0xf   :  { %513 = vmatpush3.bf16.msra.mxu0 %v560_v7 }
  0x10   :  { %514 = vmatprep.subr.bf16.mxu0 %v561_v8 }
  0x13   :  { %515 = vmatpush3.bf16.msra.mxu0 %v562_v9 }
  0x14   :  { %18 = vsyncpa [#allocation5], 0  ;;  %516 = vmatprep.subr.bf16.mxu0 %v563_v10  ;;  %v565_v14 = vld [vmem:[%s819_s2 + $0x70] sm:$0xff]   ;;  %v567_v16 = vld [vmem:[%s819_s2 + $0x78] sm:$0xff]   ;;  %v635_v21 = vmov 0.0   ;;  %vm636_vm0 = vmmov 0  }
  0x15   :  { %v566_v15 = vld [vmem:[%s819_s2 + $0x30] sm:$0xff]   ;;  %v568_v17 = vld [vmem:[%s819_s2 + $0x38] sm:$0xff]   ;;  %v40_v18 = vld [vmem:[%s817_s0] sm:$0xff]  ;;  %533 = vmatprep.subr.bf16.mxu1 %v635_v21  ;;  %537 = vmatprep.mubr.msk.bf16.mxu1 %vm636_vm0, %v635_v21  ;;  %vm244_vm1 = vcmask 261120   ;;  %vm312_vm2 = vcmask 1043456   ;;  %vm308_vm3 = vcmask 64512  }
  0x16   :  { %v42_v19 = vpack.c.bf16 %v40_v18, %v40_v18  ;;  %v569_v20 = vld [vmem:[%s821_s4] sm:$0xff]   ;;  %v570_v22 = vld [vmem:[%s821_s4 + $0x8] sm:$0xff]   ;;  %v576_v50 = vld [vmem:[%s825_s8 + $0x14] ss:$8 sps:$4 sm:$0xff]   ;;  %v638_v52 = vmov 0   ;;  %s639_s12 = smov [#allocation4]  }
  0x17   :  { %517 = vmatpush3.bf16.msra.mxu0 %v564_v13  ;;  %534 = vmatpush3.bf16.msra.mxu1 %v569_v20  ;;  %v478_v24 = vld [vmem:[%s820_s3] ss:$0 sm:$0xff]  ;;  %v573_v42 = vld [vmem:[%s825_s8 + $0x4] ss:$8 sps:$4 sm:$0xff]   ;;  %v574_v51 = vld [vmem:[%s825_s8 + $0x10] ss:$8 sps:$4 sm:$0xff]  }
  0x18   :  { %518 = vmatprep.subr.bf16.mxu0 %v565_v14  ;;  %535 = vmatprep.subr.bf16.mxu1 %v635_v21  ;;  %v300_v32 = vld [vmem:[%s823_s6] sm:$0xf]  ;;  %s637_s6 = smov 120   ;;  %s466_s13 = sshll.u32 %s639_s12, 4  ;;  %s467_s13 = int_to_ptr.vmem [resolvable:$true] %s466_s13 }
  0x19   :  { %v314_v33 = vsel %vm312_vm2, %v300_v32, 0  ;;  %v495_v34 = vld [vmem:[%s822_s5] ss:$0 sm:$0xff]  ;;  %p592_p1 = scmp.lt.s32.totalorder %s467_s13, %s467_s13 }
  0x1a   :  { %v292_v44 = vld [vmem:[%s818_s1] sm:$0xff] }
  0x1b   :  { %519 = vmatpush3.bf16.msra.mxu0 %v566_v15  ;;  %536 = vmatpush3.bf16.msra.mxu1 %v570_v22  ;;  %v571_v48 = vld [vmem:[%s825_s8] ss:$8 sps:$4 sm:$0xff]   ;;  %s587_s8 = scalar_lea.vmem %s467_s13, 128 }
  0x1c   :  { %520 = vmatprep.subr.bf16.mxu0 %v567_v16  ;;  %541 = vmatprep.subr.bf16.mxu1 %v635_v21  ;;  %v499_v53 = vld [vmem:[%s824_s7] ss:$0 sm:$0xff]  ;;  %p588_p0 = scmp.ne.s32.totalorder %s467_s13, %s587_s8  ;;  %p593_p2 = scmp.lt.s32.totalorder %s587_s8, %s587_s8 }
  0x1e   :  { %p594_p3 = por %p593_p2, %p592_p1 }
  0x1f   :  { %521 = vmatpush3.bf16.msra.mxu0 %v568_v17 }
  0x20   :  { %p595_p4 = pnand %p594_p3, %p588_p0 }
  0x22   :  { %212 = vmatmul.mubr.bf16.vlgmr.msra.gmra.mrb[0].mxu0 %v42_v19 }
  0xf5   :  { %v522_v23 = vpop.f32.mrb[0].mxu0 }
  0xf6   :  { %v523_v25 = vpop.f32.mrb[1].mxu0 }
  0xf7   :  { %v524_v26 = vadd.f32 %v523_v25, %v522_v23  ;;  %v525_v27 = vpop.f32.mrb[2].mxu0 }
  0xf8   :  { %v526_v28 = vpop.f32.mrb[3].mxu0 }
  0xf9   :  { %v214_v29 = vadd.f32 %v524_v26, %v478_v24 }
  0xfb   :  { %v219_v30 = vmax.f32 %v214_v29, 0.0 }
  0xfd   :  { %v220_v31 = vpack.c.bf16 %v219_v30, %v219_v30 }
  0xff   :  { %538 = vmatmul.mubr.msk.bf16.vlgmr.msra.gmra.mrb[0].mxu1 %vm244_vm1, %v220_v31 }
 0x100   :  { %543 = vmatprep.mubr.msk.bf16.mxu1 %vm636_vm0, %v635_v21  ;;  %542 = vmatpush3.bf16.msra.mxu1 %v314_v33 }
 0x101   :  { %397 = vmatprep.subr.bf16.mxu1 %v573_v42 }
 0x1d2   :  { %v282_v35 = vpop.f32.mrb[0].mxu1 }
 0x1d3   :  { %v283_v36 = vadd.f32 %v495_v34, %v282_v35  ;;  %v539_v37 = vpop.f32.mrb[1].mxu1 }
 0x1d4   :  { %v285_v38 = vpop.f32.mrb[2].mxu1 }
 0x1d5   :  { %v289_v39 = vmul.f32 0.5, %v283_v36  ;;  %288 = vst [vmem:[#allocation4] sm:$0xff] %v283_v36  ;;  %v540_v40 = vpop.f32.mrb[3].mxu1 }
 0x1d7   :  { %v290_v41 = vmul.f32 1.442695, %v289_v39 }
 0x1d9   :  { %577 = vpow2.f32 %v290_v41 }
 0x1e3   :  { %v578_v43 = vpop.eup %577 }
 0x1e4   :  { %294 = vrot.lane.b32.xlu0 %v578_v43, %s637_s6 }
 0x256   :  { %v295_v45 = vpop.permute.xlu0 %294 }
 0x257   :  { %v297_v46 = vmul.f32 %v295_v45, %v292_v44 }
 0x259   :  { %v298_v47 = vadd.f32 %v297_v46, %v283_v36 }
 0x25b   :  { %v299_v49 = vpack.c.bf16 %v298_v47, %v298_v47 }
 0x25d   :  { %544 = vmatmul.mubr.msk.bf16.vlgmr.msra.gmra.mrb[4].mxu1 %vm308_vm3, %v299_v49 }
 0x25e   :  { %398 = vmatpush1.bf16.msra.mxu1 %v571_v48  ;;  %429 = vmatprep.mubr.bf16.mxu1 %v638_v52 }
 0x25f   :  { %399 = vmatprep.subr.bf16.mxu1 %v576_v50 }
 0x262   :  { %400 = vmatpush1.bf16.msra.mxu1 %v574_v51 }
 0x330   :  { %v350_v54 = vpop.f32.mrb[4].mxu1 }
 0x331   :  { %v351_v55 = vadd.f32 %v499_v53, %v350_v54  ;;  %v545_v56 = vpop.f32.mrb[5].mxu1 }
 0x332   :  { %v353_v57 = vpop.f32.mrb[6].mxu1 }
 0x333   :  { %v356_v58 = vmax.f32 %v351_v55, 0.0  ;;  %v546_v59 = vpop.f32.mrb[7].mxu1 }
 0x335   :  { %v357_v60 = vpack.c.bf16 %v356_v58, %v356_v58 }
 0x337   :  { %505 = vmatmul.mubr.msk.bf16.vlgmr.msra.gmra.mrb[8].mxu1 %vm244_vm1, %v357_v60 }
 0x338   :  { %598 = shalt.err (!%p595_p4)
}
 0x339   :  { %s599_s15 = scalar_lea.hbm %s828_s11, 128 }
 0x33a   :  { %p600_p5 = scmp.ne.s32.totalorder %s828_s11, %s599_s15  ;;  %p603_p6 = scmp.lt.u32.totalorder %s599_s15, %s828_s11 }
 0x33c   :  { %p605_p7 = pnand %p603_p6, %p600_p5 }
 0x33e   :  { %608 = shalt.err (!%p605_p7)
}
 0x33f   :  { %469 = dma.vmem_to_hbm [thread:$0]  %s467_s13, 128, %s828_s11, [#allocation5]   ;;  %v364_v61 = vlaneseq  ;;  %v362_v0 = vld [vmem:[%s826_s9] sm:$0x3] }
 0x340   :  { %s640_s9 = smov [#allocation2]  }
 0x341   :  { %v365_v62 = vshrl.u32 %v364_v61, 7  ;;  %s456_s11 = sshll.u32 %s640_s9, 4  ;;  %s457_s11 = int_to_ptr.vmem [resolvable:$true] %s456_s11 }
 0x342   :  { %s609_s3 = scalar_lea.vmem %s457_s11, 256  ;;  %p614_p9 = scmp.lt.s32.totalorder %s457_s11, %s457_s11 }
 0x343   :  { %v366_v63 = vsub.s32 0, %v365_v62  ;;  %v370_v1 = vsub.s32 1, %v365_v62  ;;  %p610_p8 = scmp.ne.s32.totalorder %s457_s11, %s609_s3  ;;  %p615_p10 = scmp.lt.s32.totalorder %s609_s3, %s609_s3 }
 0x345   :  { %v367_v2 = vrot.slane %v362_v0, %v366_v63  ;;  %v371_v3 = vrot.slane %v362_v0, %v370_v1  ;;  %p616_p11 = por %p615_p10, %p614_p9 }
 0x347   :  { %p617_p12 = pnand %p616_p11, %p610_p8 }
 0x40a   :  { %v431_v4 = vpop.f32.mrb[8].mxu1 }
 0x40b   :  { %v432_v5 = vadd.f32 %v431_v4, %v367_v2  ;;  %v433_v6 = vpop.f32.mrb[9].mxu1 }
 0x40c   :  { %v434_v7 = vadd.f32 %v433_v6, %v371_v3  ;;  %v435_v8 = vpop.f32.mrb[10].mxu1 }
 0x40d   :  { %v438_v9 = vsub.f32 0.0, %v432_v5  ;;  %v436_v10 = vpop.f32.mrb[11].mxu1 }
 0x40e   :  { %v439_v11 = vsub.f32 0.0, %v434_v7 }
 0x40f   :  { %v440_v12 = vmul.f32 1.442695, %v438_v9 }
 0x410   :  { %v442_v13 = vmul.f32 1.442695, %v439_v11 }
 0x411   :  { %579 = vpow2.f32 %v440_v12 }
 0x412   :  { %581 = vpow2.f32 %v442_v13 }
 0x41b   :  { %v580_v14 = vpop.eup %579 }
 0x41c   :  { %v582_v15 = vpop.eup %581  ;;  %v444_v16 = vadd.f32 1.0, %v580_v14 }
 0x41d   :  { %v445_v17 = vadd.f32 1.0, %v582_v15 }
 0x41e   :  { %583 = vrcp.f32 %v444_v16 }
 0x41f   :  { %585 = vrcp.f32 %v445_v17 }
 0x428   :  { %v584_v18 = vpop.eup %583 }
 0x429   :  { %v586_v19 = vpop.eup %585  ;;  %448 = vst [vmem:[#allocation2] sm:$0xff] %v584_v18 }
 0x42a   :  { %449 = vst [vmem:[#allocation2 + $0x8] sm:$0xff] %v586_v19 }
 0x42b   :  { %620 = shalt.err (!%p617_p12)
}
 0x42c   :  { %s621_s6 = scalar_lea.hbm %s827_s10, 256 }
 0x42d   :  { %p622_p13 = scmp.ne.s32.totalorder %s827_s10, %s621_s6  ;;  %p625_p0 = scmp.lt.u32.totalorder %s621_s6, %s827_s10 }
 0x42f   :  { %p627_p1 = pnand %p625_p0, %p622_p13 }
 0x431   :  { %630 = shalt.err (!%p627_p1)
}
 0x432   :  { %459 = dma.vmem_to_hbm [thread:$0]  %s457_s11, 256, %s827_s10, [#allocation3]  }
 0x433   :  { %631 = dma.done.wait [#allocation3], 256  }
 0x434   :  { %632 = vsyncadd [#allocation3], 4294967040 }
 0x435   :  { %633 = dma.done.wait [#allocation5], 128  }
 0x436   :  { %634 = vsyncadd [#allocation5], 4294967168 }
 0x437   :  { %476 = vsyncpa [#allocation3], 1 }
 0x438   :  { %477 = vsyncpa [#allocation5], 1 }

</bundles_post_ra>
